<compile_context>
chip_gen: v5e
topology: v5e:2x2
jax: 0.10.0
libtpu: 0.0.40
codegen_flags: <defaults>
</compile_context>

<pallas_src>
import functools

import jax
import jax.numpy as jnp
from jax.experimental import pallas as pl
from jax.experimental.pallas import tpu as pltpu


def _round_up(x, m):
    return ((x + m - 1) // m) * m


def _pick_tile(dim, candidates, align):
    """Pick a tile for a dimension already padded to `align`.

    Returns (tile, padded_dim).  Prefers a single full-size block when the
    dimension fits the largest candidate; otherwise the largest candidate whose
    ragged padding wastes <= 1/8 of the dimension; the smallest candidate
    (== align) always matches with zero waste.
    """
    if dim <= candidates[0]:
        return dim, dim
    for c in candidates:
        padded = _round_up(dim, c)
        if (padded - dim) * 8 <= dim:
            return c, padded
    return align, dim  # unreachable (last candidate == align), kept for safety


def _detect_tpu():
    # Conservative defaults: v7x-class per-TensorCore VMEM, single core.
    vmem_cap = 64 * 1024 * 1024
    num_cores = 1
    try:
        info = pltpu.get_tpu_info()
        vmem_cap = int(getattr(info, "vmem_capacity_bytes", vmem_cap))
        num_cores = int(
            getattr(info, "num_cores", getattr(info, "tensorcores_per_chip", num_cores))
        )
    except Exception:
        pass
    return vmem_cap, num_cores


_VMEM_CAP, _NUM_CORES = _detect_tpu()
_BIG_VMEM = _VMEM_CAP >= 100 * 1024 * 1024            # v5e / v6e class (128 MiB)
_VMEM_LIMIT = (96 if _BIG_VMEM else 44) * 1024 * 1024  # stay <48 MiB/TC on v7x

# Descending tile-size candidates, generation-gated.
_M_CANDS = (1024, 512, 256, 128, 64, 32, 16, 8) if _BIG_VMEM else (512, 256, 128, 64, 32, 16, 8)
_N_CANDS = (1024, 512, 256, 128) if _BIG_VMEM else (512, 256, 128)
_K_CANDS = (2048, 1024, 512, 256, 128) if _BIG_VMEM else (1024, 512, 256, 128)


def _linear_kernel(x_ref, wt_ref, b_ref, o_ref):
    # x_ref: (tm, tk), wt_ref: (tk, tn) [weight pre-transposed at init],
    # b_ref: (1, tn), o_ref: (tm, tn) f32 -- VMEM-resident across the K axis
    # because its index_map ignores k, so we accumulate into it directly.
    k = pl.program_id(2)
    partial = jnp.dot(x_ref[...], wt_ref[...], preferred_element_type=jnp.float32)

    @pl.when(k == 0)
    def _():
        # First K step: initialize the output block and fold in the bias once.
        o_ref[...] = partial + b_ref[...]

    @pl.when(k != 0)
    def _():
        o_ref[...] += partial


@functools.partial(jax.jit, static_argnames=("d_out", "tn", "tk"))
def _linear_forward(x, w_t_pad, b_pad, *, d_out, tn, tk):
    """y = x @ W^T + b with W^T pre-padded to (Kp, Np) and b to (1, Np)."""
    N, d_in = x.shape
    Kp, Np = w_t_pad.shape

    # Pad rows only to the sublane granule (8), then pick the M tile.
    Mp = _round_up(max(N, 1), 8)
    tm, M = _pick_tile(Mp, _M_CANDS, 8)

    # Multi-TensorCore parts (v7x): make sure the parallel grid axes have at
    # least two blocks so both cores get work.
    if _NUM_CORES >= 2 and (M // tm) * (Np // tn) < 2 and Mp >= 16:
        tm = _round_up(Mp // 2, 8)
        M = _round_up(Mp, tm)

    # Zero-pad x: extra K columns contribute 0 to the product; extra rows are
    # sliced away below.  Keeps in-kernel stores lane-dense.
    xp = jnp.pad(x, ((0, M - N), (0, Kp - d_in)))

    grid = (M // tm, Np // tn, Kp // tk)

    cost = pl.CostEstimate(
        flops=2 * M * Kp * Np,
        transcendentals=0,
        bytes_accessed=(M * Kp * (Np // tn) + Kp * Np * (M // tm) + Np + M * Np) * 4,
    )

    out = pl.pallas_call(
        _linear_kernel,
        out_shape=jax.ShapeDtypeStruct((M, Np), jnp.float32),
        grid_spec=pltpu.PrefetchScalarGridSpec(
            num_scalar_prefetch=0,
            grid=grid,
            in_specs=[
                pl.BlockSpec((tm, tk), lambda i, j, k: (i, k)),
                pl.BlockSpec((tk, tn), lambda i, j, k: (k, j)),
                pl.BlockSpec((1, tn), lambda i, j, k: (0, j)),
            ],
            out_specs=pl.BlockSpec((tm, tn), lambda i, j, k: (i, j)),
        ),
        compiler_params=pltpu.CompilerParams(
            dimension_semantics=("parallel", "parallel", "arbitrary"),
            vmem_limit_bytes=_VMEM_LIMIT,
        ),
        cost_estimate=cost,
    )(xp, w_t_pad, b_pad)

    return out[:N, :d_out].astype(x.dtype)


class LinearRegression:
    """JAX/Pallas port of the PyTorch LinearRegression module."""

    def __init__(self, input_dim, output_dim, key):
        kw, kb = jax.random.split(key)
        # nn.Linear default init: U(-1/sqrt(fan_in), 1/sqrt(fan_in)).
        bound = 1.0 / (input_dim ** 0.5)
        self.weight = jax.random.uniform(
            kw, (output_dim, input_dim), jnp.float32, -bound, bound
        )
        self.bias = jax.random.uniform(kb, (output_dim,), jnp.float32, -bound, bound)
        self.input_dim = input_dim
        self.output_dim = output_dim

        # Hoisted layout work (done once, not per call): transpose W to
        # (D_in, D_out), pad D_in / D_out to lane granules, pick K / N tiles.
        # TODO(synk): optional bf16 weight storage for the MXU fast path is not
        # enabled to preserve f32 numerics of the reference module.
        self._tk, kp = _pick_tile(_round_up(input_dim, 128), _K_CANDS, 128)
        self._tn, np_ = _pick_tile(_round_up(output_dim, 128), _N_CANDS, 128)
        self._w_t_pad = jnp.pad(
            self.weight.T, ((0, kp - input_dim), (0, np_ - output_dim))
        )
        self._b_pad = jnp.pad(
            self.bias.reshape(1, output_dim), ((0, 0), (0, np_ - output_dim))
        )

    def __call__(self, x):
        return _linear_forward(
            x, self._w_t_pad, self._b_pad,
            d_out=self.output_dim, tn=self._tn, tk=self._tk,
        )


if __name__ == "__main__":
    key = jax.random.PRNGKey(0)

    # 1) Exact PyTorch-spec case: input_dim=1, output_dim=1, x shape (4, 1).
    model = LinearRegression(input_dim=1, output_dim=1, key=key)
    x = jnp.array([[1.0], [2.0], [3.0], [4.0]], dtype=jnp.float32)
    y = jax.block_until_ready(model(x))
    y_ref = x @ model.weight.T + model.bias
    assert y.shape == (4, 1)
    assert jnp.allclose(y, y_ref, atol=1e-5), (y, y_ref)

    # 2) Larger deterministic case exercising the tiled / padded path.
    k1, k2 = jax.random.split(jax.random.PRNGKey(0), 2)
    model2 = LinearRegression(input_dim=32, output_dim=16, key=k1)
    x2 = jax.random.normal(k2, (64, 32), jnp.float32)
    y2 = jax.block_until_ready(model2(x2))
    y2_ref = x2 @ model2.weight.T + model2.bias
    assert y2.shape == (64, 16)
    assert jnp.allclose(y2, y2_ref, atol=1e-4), (y2, y2_ref)

    print("KERNEL_OK")
</pallas_src>

<mosaic_0001>
module attributes {stable_mosaic.version = 11 : i64} {
  func.func @_linear_kernel(%arg0: i32, %arg1: i32, %arg2: i32, %arg3: memref<8x128xf32, #tpu.memory_space<vmem>>, %arg4: memref<128x128xf32, #tpu.memory_space<vmem>>, %arg5: memref<1x128xf32, #tpu.memory_space<vmem>>, %arg6: memref<8x128xf32, #tpu.memory_space<vmem>>) attributes {dimension_semantics = [#tpu.dimension_semantics<parallel>, #tpu.dimension_semantics<parallel>, #tpu.dimension_semantics<arbitrary>], iteration_bounds = array<i64: 1, 1, 1>, scalar_prefetch = 0 : i64, scratch_operands = 0 : i64, tpu.core_type = #tpu.core_type<tc>, window_params = [{transform_indices = @transform_0, window_bounds = array<i64: 8, 128>}, {transform_indices = @transform_1, window_bounds = array<i64: 128, 128>}, {transform_indices = @transform_2, window_bounds = array<i64: 1, 128>}, {transform_indices = @transform_3, window_bounds = array<i64: 8, 128>}]} {
    %c0 = arith.constant 0 : index
    %c0_0 = arith.constant 0 : index
    %0 = vector.load %arg3[%c0, %c0_0] : memref<8x128xf32, #tpu.memory_space<vmem>>, vector<8x128xf32>
    %c0_1 = arith.constant 0 : index
    %c0_2 = arith.constant 0 : index
    %1 = vector.load %arg4[%c0_1, %c0_2] : memref<128x128xf32, #tpu.memory_space<vmem>>, vector<128x128xf32>
    %cst = arith.constant dense<0.000000e+00> : vector<8x128xf32>
    %2 = tpu.matmul %0, %1, %cst {dimension_numbers = #tpu.dot_dimension_numbers<[1], [0], [0], [1], [0, 0, 1, 1], [], []>} : vector<8x128xf32>, vector<128x128xf32>, vector<8x128xf32> -> vector<8x128xf32>
    %c0_i32 = arith.constant 0 : i32
    %3 = arith.cmpi eq, %arg2, %c0_i32 : i32
    %4 = arith.extui %3 : i1 to i32
    %c0_i32_3 = arith.constant 0 : i32
    %5 = arith.cmpi ne, %4, %c0_i32_3 : i32
    scf.if %5 {
      %c0_6 = arith.constant 0 : index
      %c0_7 = arith.constant 0 : index
      %9 = vector.load %arg5[%c0_6, %c0_7] : memref<1x128xf32, #tpu.memory_space<vmem>>, vector<1x128xf32>
      %10 = vector.broadcast %9 : vector<1x128xf32> to vector<8x128xf32>
      %11 = arith.addf %2, %10 : vector<8x128xf32>
      %c0_8 = arith.constant 0 : index
      %c0_9 = arith.constant 0 : index
      %12 = vector.load %arg6[%c0_8, %c0_9] : memref<8x128xf32, #tpu.memory_space<vmem>>, vector<8x128xf32>
      tpu.vector_store %arg6[%c0_8, %c0_9], %11 {strides = array<i32>} : memref<8x128xf32, #tpu.memory_space<vmem>>, vector<8x128xf32>,
    } else {
    }
    %c0_i32_4 = arith.constant 0 : i32
    %6 = arith.cmpi ne, %arg2, %c0_i32_4 : i32
    %7 = arith.extui %6 : i1 to i32
    %c0_i32_5 = arith.constant 0 : i32
    %8 = arith.cmpi ne, %7, %c0_i32_5 : i32
    scf.if %8 {
      %c0_6 = arith.constant 0 : index
      %c0_7 = arith.constant 0 : index
      %9 = vector.load %arg6[%c0_6, %c0_7] : memref<8x128xf32, #tpu.memory_space<vmem>>, vector<8x128xf32>
      %10 = arith.addf %9, %2 : vector<8x128xf32>
      %c0_8 = arith.constant 0 : index
      %c0_9 = arith.constant 0 : index
      %11 = vector.load %arg6[%c0_8, %c0_9] : memref<8x128xf32, #tpu.memory_space<vmem>>, vector<8x128xf32>
      tpu.vector_store %arg6[%c0_8, %c0_9], %10 {strides = array<i32>} : memref<8x128xf32, #tpu.memory_space<vmem>>, vector<8x128xf32>,
    } else {
    }
    return
  }
  func.func @transform_0(%arg0: i32, %arg1: i32, %arg2: i32) -> (i32, i32) {
    %c0_i32 = arith.constant 0 : i32
    return %arg0, %arg2 : i32, i32
  }
  func.func @transform_1(%arg0: i32, %arg1: i32, %arg2: i32) -> (i32, i32) {
    %c0_i32 = arith.constant 0 : i32
    return %arg2, %arg1 : i32, i32
  }
  func.func @transform_2(%arg0: i32, %arg1: i32, %arg2: i32) -> (i32, i32) {
    %c0_i32 = arith.constant 0 : i32
    %c0_i32_0 = arith.constant 0 : i32
    return %c0_i32, %arg1 : i32, i32
  }
  func.func @transform_3(%arg0: i32, %arg1: i32, %arg2: i32) -> (i32, i32) {
    %c0_i32 = arith.constant 0 : i32
    return %arg0, %arg1 : i32, i32
  }
}

</mosaic_0001>

<bundles_post_ra>
// kernel: _linear_forward.1
= control target key start
LH: loop header
LB: loop body
LE: loop exit
PB: predicated region body
PF: predicated region fallthrough
CT: control target
= control target key end

     0   :  { %8 = vsyncpa [#allocation3], 0  ;;  %s119_s15 = smov [#allocation2]   ;;  %s120_s17 = smov 128   ;;  %s154_s0 = inlined_call_operand.vmem [shape: f32[8,128], index: 0, kind: input, shape index: {}]   ;;  %s155_s1 = inlined_call_operand.hbm [shape: f32[128,128], index: 1, kind: input, shape index: {}]   ;;  %s156_s2 = inlined_call_operand.vmem [shape: f32[1,128], index: 2, kind: input, shape index: {}]   ;;  %s157_s3 = inlined_call_operand.vmem [shape: f32[8,128], index: 3, kind: output, shape index: {}]  }
   0x1   :  { %s15_s14 = sshll.u32 %s155_s1, 4  ;;  %s17_s16 = sshll.u32 %s119_s15, 4  ;;  %s16_s14 = int_to_ptr.hbm [resolvable:$true] %s15_s14  ;;  %s18_s16 = int_to_ptr.vmem [resolvable:$true] %s17_s16 }
   0x2   :  { %s121_s18 = smov 8  }
   0x3   :  { %23 = dma.hbm_to_vmem [thread:$0]  %s16_s14, 2048, %s18_s16, [#allocation3], %s120_s17, %s120_s17, %s121_s18  }
   0x4   :  { %117 = dma.done.wait [#allocation3], 2048  }
   0x5   :  { %118 = vsyncadd [#allocation3], 4294965248  ;;  %v46_v0 = vld [vmem:[#allocation2 + $0x78] sm:$0xff]  ;;  %v45_v1 = vld [vmem:[#allocation2 + $0x70] sm:$0xff] }
   0x6   :  { %47 = vmatpush.msra.mxu0 %v46_v0  ;;  %v44_v2 = vld [vmem:[#allocation2 + $0x68] sm:$0xff]  ;;  %v43_v3 = vld [vmem:[#allocation2 + $0x60] sm:$0xff]  ;;  %v42_v4 = vld [vmem:[#allocation2 + $0x58] sm:$0xff] }
   0x7   :  { %v41_v5 = vld [vmem:[#allocation2 + $0x50] sm:$0xff]  ;;  %v40_v6 = vld [vmem:[#allocation2 + $0x48] sm:$0xff]  ;;  %v39_v7 = vld [vmem:[#allocation2 + $0x40] sm:$0xff] }
   0x8   :  { %48 = vmatpush.msra.mxu0 %v45_v1  ;;  %v38_v8 = vld [vmem:[#allocation2 + $0x38] sm:$0xff]  ;;  %v37_v9 = vld [vmem:[#allocation2 + $0x30] sm:$0xff]  ;;  %v36_v10 = vld [vmem:[#allocation2 + $0x28] sm:$0xff] }
   0x9   :  { %v35_v11 = vld [vmem:[#allocation2 + $0x20] sm:$0xff]  ;;  %v34_v12 = vld [vmem:[#allocation2 + $0x18] sm:$0xff]  ;;  %v33_v13 = vld [vmem:[#allocation2 + $0x10] sm:$0xff] }
   0xa   :  { %49 = vmatpush.msra.mxu0 %v44_v2  ;;  %v32_v14 = vld [vmem:[#allocation2 + $0x8] sm:$0xff]  ;;  %v31_v15 = vld [vmem:[#allocation2] sm:$0xff] }
   0xb   :  { %v30_v16 = vld [vmem:[%s154_s0] sm:$0xff] }
   0xc   :  { %50 = vmatpush.msra.mxu0 %v43_v3  ;;  %v92_v17 = vld [vmem:[%s156_s2] ss:$0 sm:$0xff] }
   0xe   :  { %51 = vmatpush.msra.mxu0 %v42_v4 }
  0x10   :  { %52 = vmatpush.msra.mxu0 %v41_v5 }
  0x12   :  { %53 = vmatpush.msra.mxu0 %v40_v6 }
  0x14   :  { %54 = vmatpush.msra.mxu0 %v39_v7 }
  0x16   :  { %55 = vmatpush.msra.mxu0 %v38_v8 }
  0x18   :  { %56 = vmatpush.msra.mxu0 %v37_v9 }
  0x1a   :  { %57 = vmatpush.msra.mxu0 %v36_v10 }
  0x1c   :  { %58 = vmatpush.msra.mxu0 %v35_v11 }
  0x1e   :  { %59 = vmatpush.msra.mxu0 %v34_v12 }
  0x20   :  { %60 = vmatpush.msra.mxu0 %v33_v13 }
  0x22   :  { %61 = vmatpush.msra.mxu0 %v32_v14 }
  0x24   :  { %62 = vmatpush.msra.mxu0 %v31_v15 }
  0x25   :  { %63 = vmatmul.f32.vlgmr.msra.gmra.mxu0 %v30_v16 }
  0xa2   :  { %v64_v18 = vpop.f32.mrf.mxu0 }
  0xa3   :  { %v75_v19 = vadd.f32 %v92_v17, %v64_v18 }
  0xa5   :  { %76 = vst [vmem:[%s157_s3] sm:$0xff] %v75_v19 }
  0xa6   :  { %88 = vsyncpa [#allocation3], 1 }

</bundles_post_ra>
